<compile_context>
chip_gen: v7x
topology: tpu7x:2x2x1
jax: 0.10.0
libtpu: 0.0.40
codegen_flags: <defaults>
</compile_context>

<pallas_src>
import jax
import jax.numpy as jnp
from jax import lax
from jax.experimental import pallas as pl
from jax.experimental.pallas import tpu as pltpu


def _round_up(x, m):
    return ((x + m - 1) // m) * m


def _pick_cout_tile(coutg_pad):
    for cand in (512, 384, 256, 128):
        if coutg_pad % cand == 0:
            return cand
    return coutg_pad


def _conv_bn_prelu_kernel(x_ref, w_ref, shift_ref, alpha_ref, o_ref):
    """One (batch*group, cout-tile, row-tile) cell: dense matmul + BN shift + PReLU."""
    tile_h = x_ref.shape[1]
    w_out_pad = x_ref.shape[2]
    kpad = x_ref.shape[3]
    co_tile = w_ref.shape[2]

    # Lane-dense MXU matmul: M = tile_h*w_out_pad (mult of 8), K = kpad
    # (mult of 128), N = co_tile (mult of 128). f32 accumulation.
    patches = x_ref[0].reshape(tile_h * w_out_pad, kpad)
    acc = jnp.dot(patches, w_ref[0], preferred_element_type=jnp.float32)

    # Eval-mode BN: scale already folded into the weights -> shift add only.
    y = acc + shift_ref[0]                       # (1, co_tile) broadcast
    # Shared-alpha PReLU (nn.PReLU() default); alpha is an SMEM scalar.
    alpha = alpha_ref[0, 0]
    y = jnp.where(y > 0, y, alpha * y)

    # Lane-dense store: last dim multiple of 128 -> unmasked full vst.
    o_ref[0] = y.reshape(tile_h, w_out_pad, co_tile).astype(o_ref.dtype)


def convolution_forward(x_nchw, w, gamma, beta, running_mean, running_var,
                        prelu_alpha, *, stride, padding, groups, eps=1e-5,
                        compute_dtype=jnp.float32):
    """x_nchw: (N, Cin, H, W) f32; w: (KH, KW, Cin//groups, Cout) (HWIO).
    Returns (N, Cout, H_out, W_out) f32 (eval-mode BN + shared-alpha PReLU)."""
    n, cin, h, wdim = x_nchw.shape
    kh, kw, cin_g, cout = w.shape
    assert cin == cin_g * groups and cout % groups == 0
    coutg = cout // groups

    h_out = (h + 2 * padding - kh) // stride + 1
    w_out = (wdim + 2 * padding - kw) // stride + 1

    # ---------------- wrapper-side packing (HBM pass, keeps kernel dense) ----
    x_nhwc = jnp.transpose(x_nchw, (0, 2, 3, 1))
    x_pad = jnp.pad(x_nhwc, ((0, 0), (padding, padding),
                             (padding, padding), (0, 0)))

    taps = []
    for dh in range(kh):
        for dw in range(kw):
            taps.append(x_pad[:, dh:dh + (h_out - 1) * stride + 1:stride,
                                 dw:dw + (w_out - 1) * stride + 1:stride, :])
    patches = jnp.stack(taps, axis=3)            # (n, h_out, w_out, kh*kw, cin)
    # Per-group K layout (tap-major, channel-minor) matching the weight layout.
    patches = patches.reshape(n, h_out, w_out, kh * kw, groups, cin_g)
    patches = jnp.transpose(patches, (0, 4, 1, 2, 3, 5))
    kg = kh * kw * cin_g
    patches = patches.reshape(n * groups, h_out, w_out, kg)

    # ---------------- MXU/lane-friendly padding ------------------------------
    kpad = _round_up(kg, 128)
    w_out_pad = _round_up(w_out, 8)

    itemsize = jnp.dtype(compute_dtype).itemsize
    vmem_in_budget = 4 << 20                                   # per input buffer
    max_tile_by_vmem = max(1, vmem_in_budget // (w_out_pad * kpad * itemsize))
    target_rows = max(1, -(-512 // w_out_pad))                 # aim M >= ~512
    tile_h = max(1, min(h_out, target_rows, max_tile_by_vmem))
    h_out_pad = _round_up(h_out, tile_h)

    patches = jnp.pad(patches, ((0, 0), (0, h_out_pad - h_out),
                                (0, w_out_pad - w_out), (0, kpad - kg)))
    patches = patches.astype(compute_dtype)                    # bf16 cast once, in HBM

    # ---------------- parameter prep (once per call) -------------------------
    inv_std = 1.0 / jnp.sqrt(running_var + eps)
    scale = (gamma * inv_std).astype(jnp.float32)              # (cout,)
    shift = (beta - running_mean * scale).astype(jnp.float32)  # (cout,)

    wg = w.astype(jnp.float32).reshape(kh, kw, cin_g, groups, coutg)
    wg = jnp.transpose(wg, (3, 0, 1, 2, 4)).reshape(groups, kg, coutg)
    wg = wg * scale.reshape(groups, coutg)[:, None, :]         # fold BN scale

    coutg_pad = _round_up(coutg, 128)
    w2d = jnp.zeros((groups, kpad, coutg_pad), jnp.float32)
    w2d = w2d.at[:, :kg, :coutg].set(wg)
    w2d = w2d.astype(compute_dtype)                            # bf16 cast once
    shift_p = jnp.zeros((groups, 1, coutg_pad), jnp.float32)
    shift_p = shift_p.at[:, 0, :coutg].set(shift.reshape(groups, coutg))

    alpha = jnp.asarray(prelu_alpha, jnp.float32).reshape(-1)[:1].reshape(1, 1)

    # ---------------- grid / specs -------------------------------------------
    co_tile = _pick_cout_tile(coutg_pad)
    n_row = h_out_pad // tile_h
    n_co = coutg_pad // co_tile
    grid = (n * groups, n_co, n_row)

    if groups == 1:
        w_map = lambda bg, j, i: (0, 0, j)
    else:
        w_map = lambda bg, j, i: (bg % groups, 0, j)

    vmem_need = 2 * (tile_h * w_out_pad * kpad * itemsize
                     + kpad * co_tile * itemsize
                     + co_tile * 4
                     + tile_h * w_out_pad * co_tile * 4) + (2 << 20)
    vmem_limit = int(min(max(vmem_need, 8 << 20), 48 << 20))   # v7x-safe ceiling

    flops = 2 * (n * groups) * h_out_pad * w_out_pad * kpad * coutg_pad
    bytes_accessed = (patches.size * itemsize + w2d.size * itemsize
                      + shift_p.size * 4
                      + (n * groups) * h_out_pad * w_out_pad * coutg_pad * 4)

    out_padded = pl.pallas_call(
        _conv_bn_prelu_kernel,
        out_shape=jax.ShapeDtypeStruct(
            (n * groups, h_out_pad, w_out_pad, coutg_pad), jnp.float32),
        grid_spec=pltpu.PrefetchScalarGridSpec(
            num_scalar_prefetch=0,
            grid=grid,
            in_specs=[
                # Only one activation row-tile per grid step (auto-pipelined).
                pl.BlockSpec((1, tile_h, w_out_pad, kpad),
                             lambda bg, j, i: (bg, i, 0, 0)),
                pl.BlockSpec((1, kpad, co_tile), w_map),
                pl.BlockSpec((1, 1, co_tile), w_map),
                pl.BlockSpec(memory_space=pltpu.MemorySpace.SMEM),
            ],
            out_specs=pl.BlockSpec((1, tile_h, w_out_pad, co_tile),
                                   lambda bg, j, i: (bg, i, 0, j)),
        ),
        compiler_params=pltpu.CompilerParams(
            dimension_semantics=("parallel", "parallel", "parallel"),
            vmem_limit_bytes=vmem_limit),
        cost_estimate=pl.CostEstimate(flops=flops, transcendentals=0,
                                      bytes_accessed=bytes_accessed),
    )(patches, w2d, shift_p, alpha)

    # ---------------- drop padding, restore NCHW -----------------------------
    out = out_padded.reshape(n, groups, h_out_pad, w_out_pad, coutg_pad)
    out = out[:, :, :h_out, :w_out, :coutg]
    out = jnp.transpose(out, (0, 1, 4, 2, 3)).reshape(n, cout, h_out, w_out)
    return out


def _reference(x_nchw, w, gamma, beta, running_mean, running_var, prelu_alpha,
               *, stride, padding, groups, eps=1e-5):
    w_oihw = jnp.transpose(w, (3, 2, 0, 1))                    # (Cout, Cin/g, KH, KW)
    y = lax.conv_general_dilated(
        x_nchw, w_oihw, window_strides=(stride, stride),
        padding=[(padding, padding), (padding, padding)],
        feature_group_count=groups)
    scale = gamma / jnp.sqrt(running_var + eps)
    shift = beta - running_mean * scale
    y = y * scale[None, :, None, None] + shift[None, :, None, None]
    return jnp.where(y > 0, y, prelu_alpha.reshape(-1)[0] * y)


if __name__ == "__main__":
    def run_case(key, n, cin, h, wdim, cout, k, stride, pad, groups,
                 compute_dtype, atol, rtol):
        kx, kw_, kg, kb, km, kv = jax.random.split(key, 6)
        x = jax.random.normal(kx, (n, cin, h, wdim), jnp.float32)
        w = 0.1 * jax.random.normal(kw_, (k, k, cin // groups, cout), jnp.float32)
        gamma = 0.5 + jax.random.uniform(kg, (cout,), jnp.float32)
        beta = 0.1 * jax.random.normal(kb, (cout,), jnp.float32)
        mean = 0.1 * jax.random.normal(km, (cout,), jnp.float32)
        var = 0.5 + jax.random.uniform(kv, (cout,), jnp.float32)
        alpha = jnp.array([0.25], jnp.float32)                 # nn.PReLU() default

        out = convolution_forward(x, w, gamma, beta, mean, var, alpha,
                                  stride=stride, padding=pad, groups=groups,
                                  compute_dtype=compute_dtype)
        out = jax.block_until_ready(out)
        ref = _reference(x, w, gamma, beta, mean, var, alpha,
                         stride=stride, padding=pad, groups=groups)

        h_out = (h + 2 * pad - k) // stride + 1
        w_out = (wdim + 2 * pad - k) // stride + 1
        assert out.shape == (n, cout, h_out, w_out), out.shape
        assert jnp.allclose(out, ref, atol=atol, rtol=rtol), \
            float(jnp.max(jnp.abs(out - ref)))

    key = jax.random.PRNGKey(0)
    k1, k2, k3 = jax.random.split(key, 3)

    # Spec config: Convolution(4, 8, kernel_size=3, stride=1, padding=1, groups=1)
    run_case(k1, 2, 4, 16, 16, 8, 3, 1, 1, 1, jnp.float32, 1e-4, 1e-4)
    # bf16 MXU-input path (recommended on v6e/v7x; f32 accumulation kept).
    run_case(k1, 2, 4, 16, 16, 8, 3, 1, 1, 1, jnp.bfloat16, 5e-2, 5e-2)
    # Grouped + strided variant (exercises per-group grid slicing, wrapper stride).
    run_case(k2, 1, 6, 13, 13, 8, 3, 2, 1, 2, jnp.float32, 1e-4, 1e-4)
    # Larger map: multi row-tile grid with a padded (partial) last row tile.
    run_case(k3, 1, 3, 33, 33, 16, 3, 1, 1, 1, jnp.float32, 1e-4, 1e-4)

    print("KERNEL_OK")
</pallas_src>

<mosaic_0001>
module attributes {stable_mosaic.version = 11 : i64} {
  func.func @_conv_bn_prelu_kernel(%arg0: i32, %arg1: i32, %arg2: i32, %arg3: memref<1x16x16x128xf32, #tpu.memory_space<vmem>>, %arg4: memref<1x128x128xf32, #tpu.memory_space<vmem>>, %arg5: memref<1x1x128xf32, #tpu.memory_space<vmem>>, %arg6: memref<1x1xf32, #tpu.memory_space<smem>>, %arg7: memref<1x16x16x128xf32, #tpu.memory_space<vmem>>) attributes {dimension_semantics = [#tpu.dimension_semantics<parallel>, #tpu.dimension_semantics<parallel>, #tpu.dimension_semantics<parallel>], iteration_bounds = array<i64: 2, 1, 1>, scalar_prefetch = 0 : i64, scratch_operands = 0 : i64, tpu.core_type = #tpu.core_type<tc>, window_params = [{transform_indices = @transform_0, window_bounds = array<i64: 1, 16, 16, 128>}, {transform_indices = @transform_1, window_bounds = array<i64: 1, 128, 128>}, {transform_indices = @transform_2, window_bounds = array<i64: 1, 1, 128>}, {transform_indices = @transform_3, window_bounds = array<i64: 1, 1>}, {transform_indices = @transform_4, window_bounds = array<i64: 1, 16, 16, 128>}]} {
    %c0 = arith.constant 0 : index
    %c0_0 = arith.constant 0 : index
    %c0_1 = arith.constant 0 : index
    %c0_2 = arith.constant 0 : index
    %0 = vector.load %arg3[%c0, %c0_0, %c0_1, %c0_2] : memref<1x16x16x128xf32, #tpu.memory_space<vmem>>, vector<1x16x16x128xf32>
    %1 = vector.shape_cast %0 : vector<1x16x16x128xf32> to vector<16x16x128xf32>
    %2 = vector.shape_cast %1 : vector<16x16x128xf32> to vector<256x128xf32>
    %c0_3 = arith.constant 0 : index
    %c0_4 = arith.constant 0 : index
    %c0_5 = arith.constant 0 : index
    %3 = vector.load %arg4[%c0_3, %c0_4, %c0_5] : memref<1x128x128xf32, #tpu.memory_space<vmem>>, vector<1x128x128xf32>
    %4 = vector.shape_cast %3 : vector<1x128x128xf32> to vector<128x128xf32>
    %cst = arith.constant dense<0.000000e+00> : vector<256x128xf32>
    %5 = tpu.matmul %2, %4, %cst {dimension_numbers = #tpu.dot_dimension_numbers<[1], [0], [0], [1], [0, 0, 1, 1], [], []>} : vector<256x128xf32>, vector<128x128xf32>, vector<256x128xf32> -> vector<256x128xf32>
    %c0_6 = arith.constant 0 : index
    %c0_7 = arith.constant 0 : index
    %c0_8 = arith.constant 0 : index
    %6 = vector.load %arg5[%c0_6, %c0_7, %c0_8] : memref<1x1x128xf32, #tpu.memory_space<vmem>>, vector<1x1x128xf32>
    %7 = vector.shape_cast %6 : vector<1x1x128xf32> to vector<1x128xf32>
    %8 = vector.broadcast %7 : vector<1x128xf32> to vector<256x128xf32>
    %9 = arith.addf %5, %8 : vector<256x128xf32>
    %c0_9 = arith.constant 0 : index
    %c0_10 = arith.constant 0 : index
    %10 = memref.load %arg6[%c0_9, %c0_10] : memref<1x1xf32, #tpu.memory_space<smem>>
    %cst_11 = arith.constant 0.000000e+00 : f32
    %11 = vector.broadcast %cst_11 : f32 to vector<256x128xf32>
    %12 = arith.cmpf ogt, %9, %11 : vector<256x128xf32>
    %13 = vector.broadcast %10 : f32 to vector<256x128xf32>
    %14 = arith.mulf %13, %9 : vector<256x128xf32>
    %15 = arith.select %12, %9, %14 : vector<256x128xi1>, vector<256x128xf32>
    %16 = vector.shape_cast %15 : vector<256x128xf32> to vector<16x16x128xf32>
    %c0_12 = arith.constant 0 : index
    %c0_13 = arith.constant 0 : index
    %c0_14 = arith.constant 0 : index
    %c0_15 = arith.constant 0 : index
    %17 = vector.load %arg7[%c0_12, %c0_13, %c0_14, %c0_15] : memref<1x16x16x128xf32, #tpu.memory_space<vmem>>, vector<1x16x16x128xf32>
    %18 = vector.shape_cast %17 : vector<1x16x16x128xf32> to vector<16x16x128xf32>
    %19 = vector.shape_cast %16 : vector<16x16x128xf32> to vector<1x16x16x128xf32>
    tpu.vector_store %arg7[%c0_12, %c0_13, %c0_14, %c0_15], %19 {strides = array<i32>} : memref<1x16x16x128xf32, #tpu.memory_space<vmem>>, vector<1x16x16x128xf32>,
    return
  }
  func.func @transform_0(%arg0: i32, %arg1: i32, %arg2: i32) -> (i32, i32, i32, i32) {
    %c0_i32 = arith.constant 0 : i32
    %c0_i32_0 = arith.constant 0 : i32
    %c0_i32_1 = arith.constant 0 : i32
    return %arg0, %arg2, %c0_i32, %c0_i32_0 : i32, i32, i32, i32
  }
  func.func @transform_1(%arg0: i32, %arg1: i32, %arg2: i32) -> (i32, i32, i32) {
    %c0_i32 = arith.constant 0 : i32
    %c0_i32_0 = arith.constant 0 : i32
    %c0_i32_1 = arith.constant 0 : i32
    return %c0_i32, %c0_i32_0, %arg1 : i32, i32, i32
  }
  func.func @transform_2(%arg0: i32, %arg1: i32, %arg2: i32) -> (i32, i32, i32) {
    %c0_i32 = arith.constant 0 : i32
    %c0_i32_0 = arith.constant 0 : i32
    %c0_i32_1 = arith.constant 0 : i32
    return %c0_i32, %c0_i32_0, %arg1 : i32, i32, i32
  }
  func.func @transform_3(%arg0: i32, %arg1: i32, %arg2: i32) -> (i32, i32) {
    %c0_i32 = arith.constant 0 : i32
    %c0_i32_0 = arith.constant 0 : i32
    %c0_i32_1 = arith.constant 0 : i32
    return %c0_i32, %c0_i32_0 : i32, i32
  }
  func.func @transform_4(%arg0: i32, %arg1: i32, %arg2: i32) -> (i32, i32, i32, i32) {
    %c0_i32 = arith.constant 0 : i32
    %c0_i32_0 = arith.constant 0 : i32
    return %arg0, %arg2, %c0_i32, %arg1 : i32, i32, i32, i32
  }
}

</mosaic_0001>

<bundles_post_ra>
// kernel: tpu_custom_call.1
= control target key start
LH: loop header
LB: loop body
LE: loop exit
PB: predicated region body
PF: predicated region fallthrough
CT: control target
= control target key end

     0   :  { %s1651_s0 = inlined_call_operand.hbm [shape: f32[2,16,16,128], index: 0, kind: input, shape index: {}]   ;;  %s1652_s1 = inlined_call_operand.hbm [shape: f32[1,128,128], index: 1, kind: input, shape index: {}]   ;;  %s1653_s2 = inlined_call_operand.vmem [shape: f32[1,1,128], index: 2, kind: input, shape index: {}]   ;;  %s1654_s3 = inlined_call_operand.<no memory space> [shape: f32[1,1], index: 3, kind: input, shape index: {}]   ;;  %s1655_s4 = inlined_call_operand.hbm [shape: f32[2,16,16,128], index: 4, kind: output, shape index: {}]  }
   0x1   :  { %9 = sst [smem:[#allocation2]] %s1654_s3 }
   0x2   :  { %10 = vsyncpa [#allocation4], 0 }
   0x3   :  { %12 = vsyncpa [#allocation4 + $0x1], 0 }
   0x4   :  { %13 = vsyncpa [#allocation7], 0 }
   0x5   :  { %14 = vsyncpa [#allocation5], 0 }
   0x6   :  { %16 = vsyncpa [#allocation5 + $0x1], 0  ;;  %s1281_s17 = smov 0   ;;  %s1283_s18 = smov 0  }
   0x7   :  { %s1285_s19 = smov 0   ;;  %s1287_s20 = smov 0  }
   0x8   :  { %s1289_s21 = smov 0   ;;  %s1291_s22 = smov 0  }
   0x9 LB: > { %s826_s3 = sadd.s32 4294967295, %s1244_s22   ;;  %s827_s23 = sadd.s32 4294967294, %s1244_s22   ;;  %s1244_s22 = sphi %s1291_s22, %s22_s22   ;;  %s1240_s21 = sphi %s1289_s21, %s1679_s21   ;;  %s1236_s20 = sphi %s1287_s20, %s1678_s20   ;;  %s1232_s19 = sphi %s1285_s19, %s1677_s19   ;;  %s1228_s18 = sphi %s1283_s18, %s1676_s18   ;;  %s1224_s17 = sphi %s1281_s17, %s1675_s17  }
   0xa   : > { %p63_p0 = scmp.ne.s32.totalorder %s1228_s18, %s1224_s17  ;;  %p1315_p1 = scmp.eq.s32.totalorder %s826_s3, 0 }
   0xb   : > { %p1319_p2 = scmp.eq.s32.totalorder %s826_s3, 1  ;;  %p170_p3 = scmp.eq.s32.totalorder %s827_s23, 1 }
   0xc   : > { %s1660_s24 = scalar_select %p1315_p1, 1, 0 }
   0xd   : > { %s1661_s25 = scalar_select %p1319_p2, 1, 0 }
   0xe   : > { %p1325_p4 = por %p1315_p1, %p63_p0  ;;  %p828_p5 = scmp.ge.s32.totalorder %s1244_s22, 1 }
   0xf   : > { %p1330_p6 = por %p170_p3, %p63_p0  ;;  %p177_p7 = scmp.lt.s32.totalorder %s1244_s22, 3 }
  0x10   : > { %s1662_s26 = scalar_select %p1325_p4, 1, 0 }
  0x11   : > { %s1663_s27 = scalar_select %p1330_p6, 1, 0 }
  0x12   : > { %p1335_p8 = pnand %p828_p5, %p177_p7  ;;  %s1246_s29 = smov [#allocation6]  }
  0x13   : > { %s191_s30 = sshll.u32 %s1246_s29, 4  ;;  %s41_s6 = sadd.s32 1, %s1240_s21  ;;  %s192_s30 = int_to_ptr.vmem [resolvable:$true] %s191_s30 }
  0x14   : > { %s1664_s28 = scalar_select %p1335_p8, 1, 0 }
  0x15   : > { %p1031_p9 = pneg %p1335_p8  ;;  %s1100_s9 = scalar_lea.hbm %s1652_s1, 2048 }
  0x16   : > { %p1101_p12 = scmp.ne.s32.totalorder %s1652_s1, %s1100_s9  ;;  %p1107_p5 = scmp.lt.u32.totalorder %s1100_s9, %s1652_s1 }
  0x17   : > { %p1344_p11 = pnand %p1031_p9, %p1315_p1 }
  0x19   : > { %p1102_p13 = pneg %p1344_p11 }
  0x1b   : > { %p1103_p0 = pnand %p1102_p13, %p1101_p12 }
  0x1d   : > { %p1104_p3 = pneg %p1103_p0 }
  0x1f   : > { %p1109_p7 = pnand %p1107_p5, %p1104_p3 }
  0x21   : > { %1112 = shalt.err (!%p1109_p7)
}
  0x22   : > { %s1113_s14 = scalar_lea.vmem %s192_s30, 2048  ;;  %p1121_p1 = scmp.lt.s32.totalorder %s192_s30, %s192_s30 }
  0x23   : > { %p1114_p9 = scmp.ne.s32.totalorder %s192_s30, %s1113_s14  ;;  %p1122_p4 = scmp.lt.s32.totalorder %s1113_s14, %s1113_s14 }
  0x25   : > { %p1116_p10 = pnand %p1114_p9, %p1102_p13  ;;  %p1123_p8 = por %p1122_p4, %p1121_p1 }
  0x27   : > { %p1117_p6 = pneg %p1116_p10 }
  0x29   : > { %p1124_p2 = pnand %p1123_p8, %p1117_p6 }
  0x2b   : > { %1127 = shalt.err (!%p1124_p2)
}
  0x2c   : > { %s1247_s15 = smov 128   ;;  %s1248_s16 = smov 8  }
  0x2d   : > { %1034 = dma.hbm_to_vmem [thread:$0]  (!%p1344_p11), %s1652_s1, 2048, %s192_s30, [#allocation7], %s1247_s15, %s1247_s15, %s1248_s16  }
  0x2e   : > { %p43_p1 = scmp.ge.s32.totalorder %s41_s6, 2  ;;  %s50_s29 = sadd.s32 1, %s1232_s19 }
  0x2f   : > { %p57_p2 = scmp.ne.s32.totalorder %s1232_s19, %s1228_s18  ;;  %p58_p4 = scmp.eq.s32.totalorder %s1244_s22, 0 }
  0x30   : > { %s1681_s6 = smov (%p43_p1, %s41_s6), 0  ;;  %p1667_p8 = scmp.ne.s32.totalorder %s1661_s25, 0 }
  0x31   : > { %p1374_p6 = por %p58_p4, %p57_p2  ;;  %s45_s8 = ssub.s32 %s1240_s21, %s1681_s6 }
  0x32   : > { %p1380_p10 = por %p1667_p8, %p57_p2  ;;  %p1044_p12 = scmp.lt.s32.totalorder %s1244_s22, 2 }
  0x33   : > { %p48_p11 = scmp.eq.s32.totalorder %s45_s8, 0  ;;  %s214_s30 = sand.u32 1, %s1232_s19  }
  0x34   : > { %s832_s9 = sshll.u32 %s214_s30, 8  ;;  %s845_s11 = sshll.u32 %s1240_s21, 12 }
  0x35   : > { %s1389_s10 = scalar_select %p48_p11, %s1232_s19, %s50_s29  }
  0x36   : > { %s1395_s14 = scalar_lea.hbm %s1651_s0, %s845_s11  ;;  %s218_s25 = scalar_lea.vmem [#allocation3], %s832_s9 }
  0x37   : > { %s228_s3 = sshll.u32 %s218_s25, 4  ;;  %p1401_p13 = pnand %p1044_p12, %p1374_p6  ;;  %s1397_s3 = int_to_ptr.vmem [resolvable:$true] %s228_s3 }
  0x38   : > { %s1405_s29 = scalar_lea.sflag [#allocation4], %s214_s30  ;;  %s1128_s8 = scalar_lea.hbm %s1395_s14, 4096 }
  0x39   : > { %p1129_p0 = scmp.ne.s32.totalorder %s1395_s14, %s1128_s8  ;;  %p1130_p3 = pneg %p1401_p13 }
  0x3a   : > { %s1133_s7 = scalar_lea.hbm %s1651_s0, 8192  ;;  %p1134_p9 = scmp.lt.u32.totalorder %s1395_s14, %s1651_s0 }
  0x3b   : > { %p1131_p5 = pnand %p1130_p3, %p1129_p0  ;;  %p1135_p1 = scmp.lt.u32.totalorder %s1133_s7, %s1128_s8 }
  0x3c   : > { %p1137_p4 = scmp.lt.u32.totalorder %s1128_s8, %s1395_s14 }
  0x3d   : > { %p1132_p7 = pneg %p1131_p5  ;;  %p1136_p2 = por %p1135_p1, %p1134_p9 }
  0x3f   : > { %p1138_p6 = por %p1137_p4, %p1136_p2 }
  0x41   : > { %p1139_p8 = pnand %p1138_p6, %p1132_p7 }
  0x43   : > { %1142 = shalt.err (!%p1139_p8)
}
  0x44   : > { %s1143_s30 = scalar_lea.vmem %s1397_s3, 4096  ;;  %s1249_s25 = smov [#allocation3]  }
  0x45   : > { %p1144_p12 = scmp.ne.s32.totalorder %s1397_s3, %s1143_s30  ;;  %s1148_s9 = sshll.u32 %s1249_s25, 4  ;;  %s1149_s9 = int_to_ptr.vmem [resolvable:$false] %s1148_s9 }
  0x46   : > { %s1150_s11 = scalar_lea.vmem %s1149_s9, 8192  ;;  %p1151_p5 = scmp.lt.s32.totalorder %s1397_s3, %s1149_s9 }
  0x47   : > { %p1146_p11 = pnand %p1144_p12, %p1130_p3  ;;  %p1152_p9 = scmp.lt.s32.totalorder %s1150_s11, %s1143_s30 }
  0x49   : > { %p1147_p0 = pneg %p1146_p11  ;;  %p1153_p1 = por %p1152_p9, %p1151_p5 }
  0x4b   : > { %p1154_p2 = pnand %p1153_p1, %p1147_p0 }
  0x4d   : > { %1157 = shalt.err (!%p1154_p2)
}
  0x4e   : > { %1038 = dma.hbm_to_vmem [thread:$0]  (!%p1401_p13), %s1395_s14, 4096, %s1397_s3, %s1405_s29, %s1247_s15, %s1247_s15, %s1248_s16  }
  0x4f   : > { %p1670_p3 = scmp.ne.s32.totalorder %s1664_s28, 0 }
  0x50   : > { %s1439_s8 = sand.u32 (!%p1670_p3), 1, %s1228_s18   ;;  %p1671_p7 = scmp.ne.s32.totalorder (!%p1670_p3), %s1662_s26, 0 }
  0x51   : > { %240 = sbr.rel (%p1670_p3) target bundleno = 389 (0x185), region = 36  ;;  %s836_s7 = sshll.u32 (!%p1670_p3), %s1439_s8, 8 }
  0x52   : > { %s243_s12 = scalar_lea.sflag (!%p1670_p3), [#allocation4], %s1439_s8  ;;  %s1445_s23 = scalar_lea.vmem (!%p1670_p3), [#allocation3], %s836_s7 }
  0x58   : > { %1211 = dma.done.wait (%p1671_p7), %s243_s12, 4096  }
  0x59   : > { %1213 = vsyncadd (%p1671_p7), %s243_s12, 4294963200  ;;  %p1672_p13 = scmp.ne.s32.totalorder %s1660_s24, 0 }
  0x5b   : > { %1215 = dma.done.wait (%p1672_p13), [#allocation7], 2048  }
  0x5c   : > { %1217 = vsyncadd (%p1672_p13), [#allocation7], 4294965248  ;;  %v315_v0 = vld [vmem:[#allocation6] sm:$0xff]  ;;  %v316_v1 = vld [vmem:[#allocation6 + $0x8] sm:$0xff]  ;;  %s563_s24 = sld [smem:[#allocation2]]  ;;  %s1506_s15 = scalar_lea.vmem [#allocation8], %s836_s7 }
  0x5d   : > { %v317_v2 = vld [vmem:[#allocation6 + $0x10] sm:$0xff]  ;;  %v975_v3 = vpack.c.bf16 %v316_v1, %v315_v0  ;;  %v318_v4 = vld [vmem:[#allocation6 + $0x18] sm:$0xff]  ;;  %v319_v6 = vld [vmem:[#allocation6 + $0x20] sm:$0xff]  ;;  %s846_s16 = sshll.u32 %s1236_s20, 12  ;;  %s711_s14 = sshll.u32 %s1506_s15, 4  ;;  %s1598_s14 = int_to_ptr.vmem [resolvable:$true] %s711_s14 }
  0x5e   : > { %v979_v5 = vpack.c.bf16 %v318_v4, %v317_v2  ;;  %v320_v7 = vld [vmem:[#allocation6 + $0x28] sm:$0xff]  ;;  %v283_v9 = vld [vmem:[%s1445_s23] sm:$0xff]  ;;  %v321_v11 = vld [vmem:[#allocation6 + $0x30] sm:$0xff]  ;;  %s1596_s29 = scalar_lea.hbm %s1655_s4, %s846_s16  ;;  %s694_s13 = scalar_lea.sflag [#allocation5], %s1439_s8 }
  0x5f   : > { %976 = vmatprep.subr.bf16.mxu0 %v975_v3  ;;  %1007 = vmatprep.subr.bf16.mxu1 %v975_v3  ;;  %v983_v8 = vpack.c.bf16 %v320_v7, %v319_v6  ;;  %v299_v10 = vld [vmem:[%s1445_s23 + $0x80] sm:$0xff]  ;;  %v322_v12 = vld [vmem:[#allocation6 + $0x38] sm:$0xff]  ;;  %v324_v15 = vld [vmem:[#allocation6 + $0x48] sm:$0xff]  ;;  %s1158_s30 = scalar_lea.vmem %s1598_s14, 4096  ;;  %s1250_s25 = smov [#allocation8]  }
  0x60   : > { %978 = vmatpush3.bf16.msra.mxu0 %v975_v3  ;;  %1015 = vmatpush3.bf16.msra.mxu1 %v975_v3  ;;  %v987_v13 = vpack.c.bf16 %v322_v12, %v321_v11  ;;  %v323_v14 = vld [vmem:[#allocation6 + $0x40] sm:$0xff]  ;;  %v325_v17 = vld [vmem:[#allocation6 + $0x50] sm:$0xff]  ;;  %v326_v18 = vld [vmem:[#allocation6 + $0x58] sm:$0xff]  ;;  %p1159_p4 = scmp.ne.s32.totalorder %s1598_s14, %s1158_s30  ;;  %s1162_s9 = sshll.u32 %s1250_s25, 4  ;;  %s1163_s9 = int_to_ptr.vmem [resolvable:$false] %s1162_s9 }
  0x61   : > { %980 = vmatprep.subr.bf16.mxu0 %v979_v5  ;;  %1008 = vmatprep.subr.bf16.mxu1 %v979_v5  ;;  %v991_v16 = vpack.c.bf16 %v324_v15, %v323_v14  ;;  %v995_v19 = vpack.c.bf16 %v326_v18, %v325_v17  ;;  %v327_v20 = vld [vmem:[#allocation6 + $0x60] sm:$0xff]  ;;  %v328_v21 = vld [vmem:[#allocation6 + $0x68] sm:$0xff]  ;;  %v329_v23 = vld [vmem:[#allocation6 + $0x70] sm:$0xff]  ;;  %s1164_s11 = scalar_lea.vmem %s1163_s9, 8192  ;;  %p1165_p12 = scmp.lt.s32.totalorder %s1598_s14, %s1163_s9 }
  0x62   : > { %927 = vmatprep.mubr.f32.mxu0 %v283_v9  ;;  %951 = vmatprep.mubr.f32.mxu1 %v299_v10  ;;  %v999_v22 = vpack.c.bf16 %v328_v21, %v327_v20  ;;  %v330_v24 = vld [vmem:[#allocation6 + $0x78] sm:$0xff]  ;;  %v284_v26 = vld [vmem:[%s1445_s23 + $0x8] sm:$0xff]  ;;  %v285_v28 = vld [vmem:[%s1445_s23 + $0x10] sm:$0xff]  ;;  %v1492_v58 = vstv %s563_s24  ;;  %p1160_p6 = pnand %p1159_p4, %p1380_p10  ;;  %p1166_p11 = scmp.lt.s32.totalorder %s1164_s11, %s1158_s30 }
  0x63   : > { %v1003_v25 = vpack.c.bf16 %v330_v24, %v329_v23  ;;  %v300_v27 = vld [vmem:[%s1445_s23 + $0x88] sm:$0xff]  ;;  %v301_v29 = vld [vmem:[%s1445_s23 + $0x90] sm:$0xff]  ;;  %v286_v30 = vld [vmem:[%s1445_s23 + $0x18] sm:$0xff] }
  0x64   : > { %982 = vmatpush3.bf16.msra.mxu0 %v979_v5  ;;  %1016 = vmatpush3.bf16.msra.mxu1 %v979_v5  ;;  %v302_v31 = vld [vmem:[%s1445_s23 + $0x98] sm:$0xff]  ;;  %v287_v32 = vld [vmem:[%s1445_s23 + $0x20] sm:$0xff]  ;;  %v288_v34 = vld [vmem:[%s1445_s23 + $0x28] sm:$0xff]  ;;  %p1161_p8 = pneg %p1160_p6  ;;  %p1167_p0 = por %p1166_p11, %p1165_p12 }
  0x65   : > { %984 = vmatprep.subr.bf16.mxu0 %v983_v8  ;;  %1009 = vmatprep.subr.bf16.mxu1 %v983_v8  ;;  %v303_v33 = vld [vmem:[%s1445_s23 + $0xa0] sm:$0xff]  ;;  %v304_v35 = vld [vmem:[%s1445_s23 + $0xa8] sm:$0xff]  ;;  %v289_v36 = vld [vmem:[%s1445_s23 + $0x30] sm:$0xff] }
  0x66   : > { %v305_v37 = vld [vmem:[%s1445_s23 + $0xb0] sm:$0xff]  ;;  %v290_v38 = vld [vmem:[%s1445_s23 + $0x38] sm:$0xff]  ;;  %v291_v40 = vld [vmem:[%s1445_s23 + $0x40] sm:$0xff]  ;;  %p1168_p5 = pnand %p1167_p0, %p1161_p8 }
  0x67   : > { %v306_v39 = vld [vmem:[%s1445_s23 + $0xb8] sm:$0xff]  ;;  %v307_v41 = vld [vmem:[%s1445_s23 + $0xc0] sm:$0xff]  ;;  %v292_v42 = vld [vmem:[%s1445_s23 + $0x48] sm:$0xff] }
  0x68   : > { %986 = vmatpush3.bf16.msra.mxu0 %v983_v8  ;;  %1017 = vmatpush3.bf16.msra.mxu1 %v983_v8  ;;  %v308_v43 = vld [vmem:[%s1445_s23 + $0xc8] sm:$0xff]  ;;  %v293_v44 = vld [vmem:[%s1445_s23 + $0x50] sm:$0xff]  ;;  %v294_v46 = vld [vmem:[%s1445_s23 + $0x58] sm:$0xff] }
  0x69   : > { %988 = vmatprep.subr.bf16.mxu0 %v987_v13  ;;  %1010 = vmatprep.subr.bf16.mxu1 %v987_v13  ;;  %v309_v45 = vld [vmem:[%s1445_s23 + $0xd0] sm:$0xff]  ;;  %v310_v47 = vld [vmem:[%s1445_s23 + $0xd8] sm:$0xff]  ;;  %v295_v48 = vld [vmem:[%s1445_s23 + $0x60] sm:$0xff] }
  0x6a   : > { %v311_v49 = vld [vmem:[%s1445_s23 + $0xe0] sm:$0xff]  ;;  %v296_v50 = vld [vmem:[%s1445_s23 + $0x68] sm:$0xff]  ;;  %v297_v52 = vld [vmem:[%s1445_s23 + $0x70] sm:$0xff] }
  0x6b   : > { %v312_v51 = vld [vmem:[%s1445_s23 + $0xe8] sm:$0xff]  ;;  %v313_v53 = vld [vmem:[%s1445_s23 + $0xf0] sm:$0xff]  ;;  %v298_v54 = vld [vmem:[%s1445_s23 + $0x78] sm:$0xff] }
  0x6c   : > { %990 = vmatpush3.bf16.msra.mxu0 %v987_v13  ;;  %1018 = vmatpush3.bf16.msra.mxu1 %v987_v13  ;;  %v314_v55 = vld [vmem:[%s1445_s23 + $0xf8] sm:$0xff]  ;;  %v1490_v56 = vld [vmem:[%s1653_s2] ss:$0 sm:$0xff] }
  0x6d   : > { %992 = vmatprep.subr.bf16.mxu0 %v991_v16  ;;  %1011 = vmatprep.subr.bf16.mxu1 %v991_v16 }
  0x70   : > { %994 = vmatpush3.bf16.msra.mxu0 %v991_v16  ;;  %1019 = vmatpush3.bf16.msra.mxu1 %v991_v16 }
  0x71   : > { %996 = vmatprep.subr.bf16.mxu0 %v995_v19  ;;  %1012 = vmatprep.subr.bf16.mxu1 %v995_v19 }
  0x74   : > { %998 = vmatpush3.bf16.msra.mxu0 %v995_v19  ;;  %1020 = vmatpush3.bf16.msra.mxu1 %v995_v19 }
  0x75   : > { %1000 = vmatprep.subr.bf16.mxu0 %v999_v22  ;;  %1013 = vmatprep.subr.bf16.mxu1 %v999_v22 }
  0x78   : > { %1002 = vmatpush3.bf16.msra.mxu0 %v999_v22  ;;  %1021 = vmatpush3.bf16.msra.mxu1 %v999_v22 }
  0x79   : > { %1004 = vmatprep.subr.bf16.mxu0 %v1003_v25  ;;  %1014 = vmatprep.subr.bf16.mxu1 %v1003_v25 }
  0x7c   : > { %1006 = vmatpush3.bf16.msra.mxu0 %v1003_v25  ;;  %1022 = vmatpush3.bf16.msra.mxu1 %v1003_v25 }
  0x7f   : > { %928 = vmatmul.mubr.f32.vlgmr.msra.gmra.mrb[0].mxu0 %v284_v26  ;;  %952 = vmatmul.mubr.f32.vlgmr.msra.gmra.mrb[0].mxu1 %v300_v27 }
  0x80   : > { %930 = vmatprep.mubr.f32.mxu0 %v285_v28  ;;  %954 = vmatprep.mubr.f32.mxu1 %v301_v29 }
  0x83   : > { %931 = vmatmul.mubr.f32.gmra.mrb[2].mxu0 %v286_v30  ;;  %955 = vmatmul.mubr.f32.gmra.mrb[2].mxu1 %v302_v31 }
  0x84   : > { %933 = vmatprep.mubr.f32.mxu0 %v287_v32  ;;  %957 = vmatprep.mubr.f32.mxu1 %v303_v33 }
  0x87   : > { %934 = vmatmul.mubr.f32.gmra.mrb[4].mxu0 %v288_v34  ;;  %958 = vmatmul.mubr.f32.gmra.mrb[4].mxu1 %v304_v35 }
  0x88   : > { %936 = vmatprep.mubr.f32.mxu0 %v289_v36  ;;  %960 = vmatprep.mubr.f32.mxu1 %v305_v37 }
  0x8b   : > { %937 = vmatmul.mubr.f32.gmra.mrb[6].mxu0 %v290_v38  ;;  %961 = vmatmul.mubr.f32.gmra.mrb[6].mxu1 %v306_v39 }
  0x8c   : > { %939 = vmatprep.mubr.f32.mxu0 %v291_v40  ;;  %963 = vmatprep.mubr.f32.mxu1 %v307_v41 }
  0x8f   : > { %940 = vmatmul.mubr.f32.gmra.mrb[8].mxu0 %v292_v42  ;;  %964 = vmatmul.mubr.f32.gmra.mrb[8].mxu1 %v308_v43 }
  0x90   : > { %942 = vmatprep.mubr.f32.mxu0 %v293_v44  ;;  %966 = vmatprep.mubr.f32.mxu1 %v309_v45 }
  0x93   : > { %943 = vmatmul.mubr.f32.gmra.mrb[10].mxu0 %v294_v46  ;;  %967 = vmatmul.mubr.f32.gmra.mrb[10].mxu1 %v310_v47 }
  0x94   : > { %945 = vmatprep.mubr.f32.mxu0 %v295_v48  ;;  %969 = vmatprep.mubr.f32.mxu1 %v311_v49 }
  0x97   : > { %946 = vmatmul.mubr.f32.gmra.mrb[12].mxu0 %v296_v50  ;;  %970 = vmatmul.mubr.f32.gmra.mrb[12].mxu1 %v312_v51 }
  0x98   : > { %948 = vmatprep.mubr.f32.mxu0 %v297_v52  ;;  %972 = vmatprep.mubr.f32.mxu1 %v313_v53 }
  0x9b   : > { %949 = vmatmul.mubr.f32.gmra.mrb[14].mxu0 %v298_v54  ;;  %973 = vmatmul.mubr.f32.gmra.mrb[14].mxu1 %v314_v55 }
 0x152   : > { %v929_v57 = vpop.f32.mrb[0].mxu0  ;;  %v953_v59 = vpop.f32.mrb[0].mxu1 }
 0x153   : > { %v410_v60 = vadd.f32 %v929_v57, %v1490_v56  ;;  %v490_v61 = vadd.f32 %v953_v59, %v1490_v56  ;;  %v404_v62 = vpop.f32.mrb[1].mxu0  ;;  %v484_v63 = vpop.f32.mrb[1].mxu1 }
 0x154   : > { %v405_v0 = vadd.f32 %v1490_v56, %v404_v62  ;;  %v485_v1 = vadd.f32 %v1490_v56, %v484_v63 }
 0x155   : > { %vm565_vm0 = vcmp.gt.f32.partialorder %v410_v60, 0.0  ;;  %v598_v2 = vmul.f32 %v1492_v58, %v410_v60  ;;  %vm581_vm1 = vcmp.gt.f32.partialorder %v490_v61, 0.0  ;;  %v614_v3 = vmul.f32 %v1492_v58, %v490_v61 }
 0x156   : > { %vm564_vm2 = vcmp.gt.f32.partialorder %v405_v0, 0.0  ;;  %v597_v4 = vmul.f32 %v1492_v58, %v405_v0  ;;  %vm580_vm3 = vcmp.gt.f32.partialorder %v485_v1, 0.0  ;;  %v613_v5 = vmul.f32 %v1492_v58, %v485_v1  ;;  %v932_v6 = vpop.f32.mrb[2].mxu0  ;;  %v956_v7 = vpop.f32.mrb[2].mxu1 }
 0x157   : > { %v630_v8 = vsel %vm565_vm0, %v410_v60, %v598_v2  ;;  %v646_v9 = vsel %vm581_vm1, %v490_v61, %v614_v3  ;;  %v420_v10 = vadd.f32 %v932_v6, %v1490_v56  ;;  %v500_v11 = vadd.f32 %v956_v7, %v1490_v56  ;;  %v414_v12 = vpop.f32.mrb[3].mxu0  ;;  %v494_v13 = vpop.f32.mrb[3].mxu1 }
 0x158   : > { %662 = vst [vmem:[%s1506_s15 + $0x8] sm:$0xff] %v630_v8  ;;  %678 = vst [vmem:[%s1506_s15 + $0x88] sm:$0xff] %v646_v9  ;;  %v629_v14 = vsel %vm564_vm2, %v405_v0, %v597_v4  ;;  %v645_v15 = vsel %vm580_vm3, %v485_v1, %v613_v5  ;;  %v415_v16 = vadd.f32 %v1490_v56, %v414_v12 }
 0x159   : > { %v495_v17 = vadd.f32 %v1490_v56, %v494_v13  ;;  %661 = vst [vmem:[%s1506_s15] sm:$0xff] %v629_v14  ;;  %677 = vst [vmem:[%s1506_s15 + $0x80] sm:$0xff] %v645_v15  ;;  %vm567_vm4 = vcmp.gt.f32.partialorder %v420_v10, 0.0  ;;  %v600_v18 = vmul.f32 %v1492_v58, %v420_v10  ;;  %vm583_vm5 = vcmp.gt.f32.partialorder %v500_v11, 0.0 }
 0x15a   : > { %v616_v19 = vmul.f32 %v1492_v58, %v500_v11  ;;  %vm566_vm6 = vcmp.gt.f32.partialorder %v415_v16, 0.0  ;;  %v599_v20 = vmul.f32 %v1492_v58, %v415_v16  ;;  %v935_v22 = vpop.f32.mrb[4].mxu0  ;;  %v959_v23 = vpop.f32.mrb[4].mxu1 }
 0x15b   : > { %vm582_vm7 = vcmp.gt.f32.partialorder %v495_v17, 0.0  ;;  %v615_v21 = vmul.f32 %v1492_v58, %v495_v17  ;;  %v632_v24 = vsel %vm567_vm4, %v420_v10, %v600_v18  ;;  %v430_v26 = vadd.f32 %v935_v22, %v1490_v56  ;;  %v424_v28 = vpop.f32.mrb[5].mxu0  ;;  %v504_v29 = vpop.f32.mrb[5].mxu1 }
 0x15c   : > { %v648_v25 = vsel %vm583_vm5, %v500_v11, %v616_v19  ;;  %v510_v27 = vadd.f32 %v959_v23, %v1490_v56  ;;  %664 = vst [vmem:[%s1506_s15 + $0x18] sm:$0xff] %v632_v24  ;;  %v631_v30 = vsel %vm566_vm6, %v415_v16, %v599_v20  ;;  %v425_v32 = vadd.f32 %v1490_v56, %v424_v28 }
 0x15d   : > { %680 = vst [vmem:[%s1506_s15 + $0x98] sm:$0xff] %v648_v25  ;;  %v647_v31 = vsel %vm582_vm7, %v495_v17, %v615_v21  ;;  %v505_v33 = vadd.f32 %v1490_v56, %v504_v29  ;;  %663 = vst [vmem:[%s1506_s15 + $0x10] sm:$0xff] %v631_v30  ;;  %vm569_vm8 = vcmp.gt.f32.partialorder %v430_v26, 0.0  ;;  %v602_v34 = vmul.f32 %v1492_v58, %v430_v26 }
 0x15e   : > { %679 = vst [vmem:[%s1506_s15 + $0x90] sm:$0xff] %v647_v31  ;;  %vm585_vm9 = vcmp.gt.f32.partialorder %v510_v27, 0.0  ;;  %v618_v35 = vmul.f32 %v1492_v58, %v510_v27  ;;  %vm568_vm10 = vcmp.gt.f32.partialorder %v425_v32, 0.0  ;;  %v601_v36 = vmul.f32 %v1492_v58, %v425_v32  ;;  %v938_v38 = vpop.f32.mrb[6].mxu0  ;;  %v962_v39 = vpop.f32.mrb[6].mxu1 }
 0x15f   : > { %vm584_vm11 = vcmp.gt.f32.partialorder %v505_v33, 0.0  ;;  %v617_v37 = vmul.f32 %v1492_v58, %v505_v33  ;;  %v634_v40 = vsel %vm569_vm8, %v430_v26, %v602_v34  ;;  %v440_v42 = vadd.f32 %v938_v38, %v1490_v56  ;;  %v434_v44 = vpop.f32.mrb[7].mxu0  ;;  %v514_v45 = vpop.f32.mrb[7].mxu1 }
 0x160   : > { %v650_v41 = vsel %vm585_vm9, %v510_v27, %v618_v35  ;;  %v520_v43 = vadd.f32 %v962_v39, %v1490_v56  ;;  %666 = vst [vmem:[%s1506_s15 + $0x28] sm:$0xff] %v634_v40  ;;  %v633_v46 = vsel %vm568_vm10, %v425_v32, %v601_v36  ;;  %v435_v48 = vadd.f32 %v1490_v56, %v434_v44 }
 0x161   : > { %682 = vst [vmem:[%s1506_s15 + $0xa8] sm:$0xff] %v650_v41  ;;  %v649_v47 = vsel %vm584_vm11, %v505_v33, %v617_v37  ;;  %v515_v49 = vadd.f32 %v1490_v56, %v514_v45  ;;  %665 = vst [vmem:[%s1506_s15 + $0x20] sm:$0xff] %v633_v46  ;;  %vm571_vm12 = vcmp.gt.f32.partialorder %v440_v42, 0.0  ;;  %v604_v50 = vmul.f32 %v1492_v58, %v440_v42 }
 0x162   : > { %681 = vst [vmem:[%s1506_s15 + $0xa0] sm:$0xff] %v649_v47  ;;  %vm587_vm13 = vcmp.gt.f32.partialorder %v520_v43, 0.0  ;;  %v620_v51 = vmul.f32 %v1492_v58, %v520_v43  ;;  %vm570_vm14 = vcmp.gt.f32.partialorder %v435_v48, 0.0  ;;  %v603_v52 = vmul.f32 %v1492_v58, %v435_v48  ;;  %v941_v54 = vpop.f32.mrb[8].mxu0  ;;  %v965_v55 = vpop.f32.mrb[8].mxu1 }
 0x163   : > { %vm586_vm15 = vcmp.gt.f32.partialorder %v515_v49, 0.0  ;;  %v619_v53 = vmul.f32 %v1492_v58, %v515_v49  ;;  %v636_v57 = vsel %vm571_vm12, %v440_v42, %v604_v50  ;;  %v450_v60 = vadd.f32 %v941_v54, %v1490_v56  ;;  %v444_v62 = vpop.f32.mrb[9].mxu0  ;;  %v524_v63 = vpop.f32.mrb[9].mxu1 }
 0x164   : > { %v652_v59 = vsel %vm587_vm13, %v520_v43, %v620_v51  ;;  %v530_v61 = vadd.f32 %v965_v55, %v1490_v56  ;;  %668 = vst [vmem:[%s1506_s15 + $0x38] sm:$0xff] %v636_v57  ;;  %v635_v0 = vsel %vm570_vm14, %v435_v48, %v603_v52  ;;  %v445_v2 = vadd.f32 %v1490_v56, %v444_v62 }
 0x165   : > { %684 = vst [vmem:[%s1506_s15 + $0xb8] sm:$0xff] %v652_v59  ;;  %v651_v1 = vsel %vm586_vm15, %v515_v49, %v619_v53  ;;  %v525_v3 = vadd.f32 %v1490_v56, %v524_v63  ;;  %667 = vst [vmem:[%s1506_s15 + $0x30] sm:$0xff] %v635_v0  ;;  %vm573_vm0 = vcmp.gt.f32.partialorder %v450_v60, 0.0  ;;  %v606_v4 = vmul.f32 %v1492_v58, %v450_v60 }
 0x166   : > { %683 = vst [vmem:[%s1506_s15 + $0xb0] sm:$0xff] %v651_v1  ;;  %vm589_vm1 = vcmp.gt.f32.partialorder %v530_v61, 0.0  ;;  %v622_v5 = vmul.f32 %v1492_v58, %v530_v61  ;;  %vm572_vm2 = vcmp.gt.f32.partialorder %v445_v2, 0.0  ;;  %v605_v6 = vmul.f32 %v1492_v58, %v445_v2  ;;  %v944_v8 = vpop.f32.mrb[10].mxu0  ;;  %v968_v9 = vpop.f32.mrb[10].mxu1 }
 0x167   : > { %vm588_vm3 = vcmp.gt.f32.partialorder %v525_v3, 0.0  ;;  %v621_v7 = vmul.f32 %v1492_v58, %v525_v3  ;;  %v638_v10 = vsel %vm573_vm0, %v450_v60, %v606_v4  ;;  %v460_v12 = vadd.f32 %v944_v8, %v1490_v56  ;;  %v454_v14 = vpop.f32.mrb[11].mxu0  ;;  %v534_v15 = vpop.f32.mrb[11].mxu1 }
 0x168   : > { %v654_v11 = vsel %vm589_vm1, %v530_v61, %v622_v5  ;;  %v540_v13 = vadd.f32 %v968_v9, %v1490_v56  ;;  %670 = vst [vmem:[%s1506_s15 + $0x48] sm:$0xff] %v638_v10  ;;  %v637_v16 = vsel %vm572_vm2, %v445_v2, %v605_v6  ;;  %v455_v18 = vadd.f32 %v1490_v56, %v454_v14 }
 0x169   : > { %686 = vst [vmem:[%s1506_s15 + $0xc8] sm:$0xff] %v654_v11  ;;  %v653_v17 = vsel %vm588_vm3, %v525_v3, %v621_v7  ;;  %v535_v19 = vadd.f32 %v1490_v56, %v534_v15  ;;  %669 = vst [vmem:[%s1506_s15 + $0x40] sm:$0xff] %v637_v16  ;;  %vm575_vm4 = vcmp.gt.f32.partialorder %v460_v12, 0.0  ;;  %v608_v20 = vmul.f32 %v1492_v58, %v460_v12 }
 0x16a   : > { %685 = vst [vmem:[%s1506_s15 + $0xc0] sm:$0xff] %v653_v17  ;;  %vm591_vm5 = vcmp.gt.f32.partialorder %v540_v13, 0.0  ;;  %v624_v21 = vmul.f32 %v1492_v58, %v540_v13  ;;  %vm574_vm6 = vcmp.gt.f32.partialorder %v455_v18, 0.0  ;;  %v607_v22 = vmul.f32 %v1492_v58, %v455_v18  ;;  %v947_v24 = vpop.f32.mrb[12].mxu0  ;;  %v971_v25 = vpop.f32.mrb[12].mxu1 }
 0x16b   : > { %vm590_vm7 = vcmp.gt.f32.partialorder %v535_v19, 0.0  ;;  %v623_v23 = vmul.f32 %v1492_v58, %v535_v19  ;;  %v640_v26 = vsel %vm575_vm4, %v460_v12, %v608_v20  ;;  %v470_v28 = vadd.f32 %v947_v24, %v1490_v56  ;;  %v464_v30 = vpop.f32.mrb[13].mxu0  ;;  %v544_v31 = vpop.f32.mrb[13].mxu1 }
 0x16c   : > { %v656_v27 = vsel %vm591_vm5, %v540_v13, %v624_v21  ;;  %v550_v29 = vadd.f32 %v971_v25, %v1490_v56  ;;  %672 = vst [vmem:[%s1506_s15 + $0x58] sm:$0xff] %v640_v26  ;;  %v639_v32 = vsel %vm574_vm6, %v455_v18, %v607_v22  ;;  %v465_v34 = vadd.f32 %v1490_v56, %v464_v30 }
 0x16d   : > { %688 = vst [vmem:[%s1506_s15 + $0xd8] sm:$0xff] %v656_v27  ;;  %v655_v33 = vsel %vm590_vm7, %v535_v19, %v623_v23  ;;  %v545_v35 = vadd.f32 %v1490_v56, %v544_v31  ;;  %671 = vst [vmem:[%s1506_s15 + $0x50] sm:$0xff] %v639_v32  ;;  %vm577_vm8 = vcmp.gt.f32.partialorder %v470_v28, 0.0  ;;  %v610_v36 = vmul.f32 %v1492_v58, %v470_v28 }
 0x16e   : > { %687 = vst [vmem:[%s1506_s15 + $0xd0] sm:$0xff] %v655_v33  ;;  %vm593_vm9 = vcmp.gt.f32.partialorder %v550_v29, 0.0  ;;  %v626_v37 = vmul.f32 %v1492_v58, %v550_v29  ;;  %vm576_vm10 = vcmp.gt.f32.partialorder %v465_v34, 0.0  ;;  %v609_v38 = vmul.f32 %v1492_v58, %v465_v34  ;;  %v950_v40 = vpop.f32.mrb[14].mxu0  ;;  %v974_v41 = vpop.f32.mrb[14].mxu1 }
 0x16f   : > { %vm592_vm11 = vcmp.gt.f32.partialorder %v545_v35, 0.0  ;;  %v625_v39 = vmul.f32 %v1492_v58, %v545_v35  ;;  %v642_v42 = vsel %vm577_vm8, %v470_v28, %v610_v36  ;;  %v480_v44 = vadd.f32 %v950_v40, %v1490_v56  ;;  %v474_v46 = vpop.f32.mrb[15].mxu0  ;;  %v554_v47 = vpop.f32.mrb[15].mxu1 }
 0x170   : > { %v658_v43 = vsel %vm593_vm9, %v550_v29, %v626_v37  ;;  %v560_v45 = vadd.f32 %v974_v41, %v1490_v56  ;;  %674 = vst [vmem:[%s1506_s15 + $0x68] sm:$0xff] %v642_v42  ;;  %v641_v48 = vsel %vm576_vm10, %v465_v34, %v609_v38  ;;  %v475_v50 = vadd.f32 %v1490_v56, %v474_v46 }
 0x171   : > { %690 = vst [vmem:[%s1506_s15 + $0xe8] sm:$0xff] %v658_v43  ;;  %v657_v49 = vsel %vm592_vm11, %v545_v35, %v625_v39  ;;  %v555_v51 = vadd.f32 %v1490_v56, %v554_v47  ;;  %673 = vst [vmem:[%s1506_s15 + $0x60] sm:$0xff] %v641_v48  ;;  %vm579_vm12 = vcmp.gt.f32.partialorder %v480_v44, 0.0  ;;  %v612_v52 = vmul.f32 %v1492_v58, %v480_v44 }
 0x172   : > { %689 = vst [vmem:[%s1506_s15 + $0xe0] sm:$0xff] %v657_v49  ;;  %vm595_vm13 = vcmp.gt.f32.partialorder %v560_v45, 0.0  ;;  %v628_v53 = vmul.f32 %v1492_v58, %v560_v45  ;;  %vm578_vm14 = vcmp.gt.f32.partialorder %v475_v50, 0.0  ;;  %v611_v54 = vmul.f32 %v1492_v58, %v475_v50 }
 0x173   : > { %vm594_vm15 = vcmp.gt.f32.partialorder %v555_v51, 0.0  ;;  %v627_v55 = vmul.f32 %v1492_v58, %v555_v51  ;;  %v644_v56 = vsel %vm579_vm12, %v480_v44, %v612_v52 }
 0x174   : > { %v660_v57 = vsel %vm595_vm13, %v560_v45, %v628_v53  ;;  %676 = vst [vmem:[%s1506_s15 + $0x78] sm:$0xff] %v644_v56  ;;  %v643_v59 = vsel %vm578_vm14, %v475_v50, %v611_v54 }
 0x175   : > { %692 = vst [vmem:[%s1506_s15 + $0xf8] sm:$0xff] %v660_v57  ;;  %v659_v60 = vsel %vm594_vm15, %v555_v51, %v627_v55  ;;  %675 = vst [vmem:[%s1506_s15 + $0x70] sm:$0xff] %v643_v59 }
 0x176   : > { %691 = vst [vmem:[%s1506_s15 + $0xf0] sm:$0xff] %v659_v60 }
 0x177   : > { %1171 = shalt.err (!%p1168_p5)
}
 0x178   : > { %s1172_s7 = scalar_lea.hbm %s1596_s29, 4096  ;;  %s1176_s24 = scalar_lea.hbm %s1655_s4, 8192 }
 0x179   : > { %p1173_p9 = scmp.ne.s32.totalorder %s1596_s29, %s1172_s7  ;;  %p1177_p3 = scmp.lt.u32.totalorder %s1596_s29, %s1655_s4 }
 0x17a   : > { %p1178_p7 = scmp.lt.u32.totalorder %s1176_s24, %s1172_s7  ;;  %p1180_p4 = scmp.lt.u32.totalorder %s1172_s7, %s1596_s29 }
 0x17b   : > { %p1174_p1 = pnand %p1173_p9, %p1380_p10 }
 0x17c   : > { %p1179_p13 = por %p1178_p7, %p1177_p3 }
 0x17d   : > { %p1175_p2 = pneg %p1174_p1 }
 0x17e   : > { %p1181_p6 = por %p1180_p4, %p1179_p13 }
 0x180   : > { %p1182_p8 = pnand %p1181_p6, %p1175_p2 }
 0x182   : > { %1185 = shalt.err (!%p1182_p8)
}
 0x183   : > { %s1251_s15 = smov 128   ;;  %s1252_s16 = smov 8  }
 0x184   : > { %1029 = dma.vmem_to_hbm [thread:$0]  (%p1380_p10), %s1598_s14, 4096, %s1596_s29, %s694_s13, %s1251_s15, %s1251_s15, %s1252_s16  }
 0x185 PF: > { %s726_s20 = sand.u32 1, %s1224_s17   ;;  %p1673_p12 = scmp.ne.s32.totalorder %s1663_s27, 0 }
 0x186   : > { %p1674_p11 = scmp.ge.s32.totalorder %s1244_s22, 2  ;;  %s727_s3 = scalar_lea.sflag [#allocation5], %s726_s20 }
 0x188   : > { %p1040_p0 = pnand %p1674_p11, %p1673_p12 }
 0x18a   : > { %1219 = dma.done.wait (!%p1040_p0), %s727_s3, 4096  }
 0x18b   : > { %1221 = vsyncadd (!%p1040_p0), %s727_s3, 4294963200  ;;  %s22_s22 = sadd.s32 1, %s1244_s22   ;;  %s1675_s17 = smov %s1228_s18 }
 0x18c   : > { %p19_p5 = scmp.ge.s32.totalorder %s22_s22, 4   ;;  %s1676_s18 = smov %s1232_s19 }
 0x18d   : > { %s1677_s19 = smov %s1389_s10  ;;  %s1678_s20 = smov %s1240_s21 }
 0x18e   : > { %s1679_s21 = smov %s1681_s6  ;;  %21 = sbr.rel (!%p19_p5) target bundleno = 9 (0x9), region = 89 }
 0x195   :  { %732 = vsyncpa [#allocation4], 1 }
 0x196   :  { %734 = vsyncpa [#allocation4 + $0x1], 1 }
 0x197   :  { %735 = vsyncpa [#allocation7], 1 }
 0x198   :  { %736 = vsyncpa [#allocation5], 1 }
 0x199   :  { %738 = vsyncpa [#allocation5 + $0x1], 1 }

</bundles_post_ra>
